<compile_context>
chip_gen: v7x
topology: tpu7x:2x2x1
jax: 0.10.0
libtpu: 0.0.40
codegen_flags: <defaults>
</compile_context>

<pallas_src>
import jax
import jax.numpy as jnp
from jax.experimental import pallas as pl
from jax.experimental.pallas import tpu as pltpu


def _mlp_kernel(x_ref,
                w1_ref, b1_ref,
                w2_ref, b2_ref,
                w3_ref, b3_ref,
                w4t_ref, b4t_ref,
                out_ref):
    """Fused 4-layer MLP + softmax.

    x_ref   : (tile_b, n_feature) f32 (cast to bf16 at the dot, in-kernel)
    w1..w3  : (in, out) bf16 ; b1..b3 : (1, out) f32
    w4t     : (n_label, latent) bf16 (PyTorch layout) ; b4t : (n_label, 1) f32
    out_ref : (2*n_label, tile_b) f32 ; rows [0:L) = logits^T, [L:2L) = probs^T
    """
    n_label = w4t_ref.shape[0]

    # Layers 1-3: x @ W + b, ReLU. bf16 MXU operands, f32 accumulation.
    h = jnp.dot(x_ref[...].astype(jnp.bfloat16), w1_ref[...],
                preferred_element_type=jnp.float32)
    h = jnp.maximum(h + b1_ref[...], 0.0)

    h = jnp.dot(h.astype(jnp.bfloat16), w2_ref[...],
                preferred_element_type=jnp.float32)
    h = jnp.maximum(h + b2_ref[...], 0.0)

    h = jnp.dot(h.astype(jnp.bfloat16), w3_ref[...],
                preferred_element_type=jnp.float32)
    h = jnp.maximum(h + b3_ref[...], 0.0)

    # Layer 4 computed transposed so the output lane axis is the batch axis
    # (lane-dense stores). The (tile_b, latent) -> (latent, tile_b) transpose
    # runs on the XLU (non-saturated slot).
    h_t = jnp.transpose(h).astype(jnp.bfloat16)          # (latent, tile_b)
    logits_t = jnp.dot(w4t_ref[...], h_t,
                       preferred_element_type=jnp.float32) + b4t_ref[...]

    # Fused predict_proba epilogue: softmax over labels (sublane axis),
    # exact normalization so rows sum to 1.
    m = jnp.max(logits_t, axis=0, keepdims=True)
    e = jnp.exp(logits_t - m)
    denom = jnp.sum(e, axis=0, keepdims=True)
    probs_t = e / denom

    # Single fused output block -> one DMA per grid step, unmasked lane-dense
    # stores (tile_b is a multiple of 128).
    out_ref[0:n_label, :] = logits_t.astype(out_ref.dtype)
    out_ref[n_label:2 * n_label, :] = probs_t.astype(out_ref.dtype)


def mlp_forward(x, params, max_tile_b=2048):
    """Fused 4-layer MLP forward + softmax.

    x: (B, n_feature) f32.  params: output of prepare_params() (bf16 weights).
    Returns (logits, probs), each (B, n_label) f32.
    """
    (w1, b1, w2, b2, w3, b3, w4t, b4t) = params
    B, n_feature = x.shape
    n_label = w4t.shape[0]

    # Tile selection: per grid step overhead (~0.35us) dominates this kernel,
    # so use as few, as large, steps as possible.
    if B <= max_tile_b:
        Bp = ((B + 127) // 128) * 128       # lane-align; no-op if B % 128 == 0
        tile_b = Bp
    else:
        tile_b = max_tile_b
        Bp = pl.cdiv(B, tile_b) * tile_b
    n_steps = Bp // tile_b

    if Bp != B:                              # skipped entirely when B % 128 == 0
        x = jnp.pad(x, ((0, Bp - B), (0, 0)))

    # Weights/biases: full-array blocks with a constant block index -> they
    # stay VMEM-resident across batch-grid steps; only activations pipeline.
    resident = lambda a: pl.BlockSpec(a.shape, lambda i: (0, 0))

    out_t = pl.pallas_call(
        _mlp_kernel,
        out_shape=jax.ShapeDtypeStruct((2 * n_label, Bp), jnp.float32),
        grid_spec=pltpu.PrefetchScalarGridSpec(
            num_scalar_prefetch=0,
            grid=(n_steps,),
            in_specs=[pl.BlockSpec((tile_b, n_feature), lambda i: (i, 0)),
                      resident(w1), resident(b1),
                      resident(w2), resident(b2),
                      resident(w3), resident(b3),
                      resident(w4t), resident(b4t)],
            out_specs=pl.BlockSpec((2 * n_label, tile_b), lambda i: (0, i)),
        ),
        compiler_params=pltpu.CompilerParams(
            dimension_semantics=("parallel",)),
    )(x, w1, b1, w2, b2, w3, b3, w4t, b4t)

    # Tiny (n_label x B) slices/transposes; fused under jit.
    logits = out_t[:n_label, :B].T
    probs = out_t[n_label:, :B].T
    return logits, probs


def init_params(key, n_feature, n_label, latent_dim):
    """torch.nn.Linear-style init (uniform +-1/sqrt(fan_in)), f32.

    Layers 1-3 stored as (in, out) with (1, out) bias; layer 4 stored in
    PyTorch-native (n_label, latent) layout with (n_label, 1) bias so the
    kernel can compute logits^T directly.
    """
    def unif(k, shape, fan_in):
        bound = 1.0 / jnp.sqrt(jnp.float32(fan_in))
        return jax.random.uniform(k, shape, jnp.float32, -bound, bound)

    key, k1w, k1b, k2w, k2b, k3w, k3b, k4w, k4b = jax.random.split(key, 9)
    w1 = unif(k1w, (n_feature, latent_dim), n_feature)
    b1 = unif(k1b, (1, latent_dim), n_feature)
    w2 = unif(k2w, (latent_dim, latent_dim), latent_dim)
    b2 = unif(k2b, (1, latent_dim), latent_dim)
    w3 = unif(k3w, (latent_dim, latent_dim), latent_dim)
    b3 = unif(k3b, (1, latent_dim), latent_dim)
    w4t = unif(k4w, (n_label, latent_dim), latent_dim)
    b4t = unif(k4b, (n_label, 1), latent_dim)
    return (w1, b1, w2, b2, w3, b3, w4t, b4t)


def prepare_params(params):
    """One-time bf16 cast of the matmul weights (MXU operands).

    Hoisted out of the forward hot path so mlp_forward launches no cast ops.
    Biases stay f32 (epilogue math is f32).
    """
    w1, b1, w2, b2, w3, b3, w4t, b4t = params
    cast = lambda w: w.astype(jnp.bfloat16)
    return (cast(w1), b1, cast(w2), b2, cast(w3), b3, cast(w4t), b4t)


def mlp_forward_ref(x, params):
    """Pure-f32 JAX reference (forward logits)."""
    (w1, b1, w2, b2, w3, b3, w4t, b4t) = params
    h = jnp.maximum(x @ w1 + b1, 0.0)
    h = jnp.maximum(h @ w2 + b2, 0.0)
    h = jnp.maximum(h @ w3 + b3, 0.0)
    return h @ w4t.T + b4t.T


if __name__ == "__main__":
    # Shapes consistent with the module: features=32, labels=8, latent=128
    # (constructor arg; chosen lane-aligned). Batch=256 -> one grid step,
    # no padding, lane-dense (16, 256) output slab.
    B, N_FEATURE, N_LABEL, LATENT = 256, 32, 8, 128

    key = jax.random.PRNGKey(0)
    key, kx = jax.random.split(key)
    x = jax.random.normal(kx, (B, N_FEATURE), jnp.float32)

    params = init_params(key, N_FEATURE, N_LABEL, LATENT)
    prepared = prepare_params(params)          # one-time bf16 weight prep

    fwd = jax.jit(mlp_forward)
    logits, probs = fwd(x, prepared)
    logits = jax.block_until_ready(logits)
    probs = jax.block_until_ready(probs)

    ref_logits = mlp_forward_ref(x, params)
    ref_probs = jax.nn.softmax(ref_logits, axis=1)

    assert logits.shape == (B, N_LABEL)
    assert probs.shape == (B, N_LABEL)
    # bf16 matmuls (f32 accumulate) -> loosened tolerance vs the f32 reference.
    assert jnp.allclose(logits, ref_logits, atol=3e-2, rtol=3e-2), \
        "logits mismatch vs reference"
    assert jnp.allclose(probs, ref_probs, atol=3e-2, rtol=3e-2), \
        "probs mismatch vs reference"

    print("KERNEL_OK")
</pallas_src>

<mosaic_0001>
module attributes {stable_mosaic.version = 11 : i64} {
  func.func @_mlp_kernel(%arg0: i32, %arg1: memref<256x32xf32, #tpu.memory_space<vmem>>, %arg2: memref<32x128xbf16, #tpu.memory_space<vmem>>, %arg3: memref<1x128xf32, #tpu.memory_space<vmem>>, %arg4: memref<128x128xbf16, #tpu.memory_space<vmem>>, %arg5: memref<1x128xf32, #tpu.memory_space<vmem>>, %arg6: memref<128x128xbf16, #tpu.memory_space<vmem>>, %arg7: memref<1x128xf32, #tpu.memory_space<vmem>>, %arg8: memref<8x128xbf16, #tpu.memory_space<vmem>>, %arg9: memref<8x1xf32, #tpu.memory_space<vmem>>, %arg10: memref<16x256xf32, #tpu.memory_space<vmem>>) attributes {dimension_semantics = [#tpu.dimension_semantics<parallel>], iteration_bounds = array<i64: 1>, scalar_prefetch = 0 : i64, scratch_operands = 0 : i64, tpu.core_type = #tpu.core_type<tc>, window_params = [{transform_indices = @transform_0, window_bounds = array<i64: 256, 32>}, {pipeline_mode = #tpu.pipeline_mode<synchronous>, transform_indices = @transform_1, window_bounds = array<i64: 32, 128>}, {pipeline_mode = #tpu.pipeline_mode<synchronous>, transform_indices = @transform_2, window_bounds = array<i64: 1, 128>}, {pipeline_mode = #tpu.pipeline_mode<synchronous>, transform_indices = @transform_3, window_bounds = array<i64: 128, 128>}, {pipeline_mode = #tpu.pipeline_mode<synchronous>, transform_indices = @transform_4, window_bounds = array<i64: 1, 128>}, {pipeline_mode = #tpu.pipeline_mode<synchronous>, transform_indices = @transform_5, window_bounds = array<i64: 128, 128>}, {pipeline_mode = #tpu.pipeline_mode<synchronous>, transform_indices = @transform_6, window_bounds = array<i64: 1, 128>}, {pipeline_mode = #tpu.pipeline_mode<synchronous>, transform_indices = @transform_7, window_bounds = array<i64: 8, 128>}, {pipeline_mode = #tpu.pipeline_mode<synchronous>, transform_indices = @transform_8, window_bounds = array<i64: 8, 1>}, {transform_indices = @transform_9, window_bounds = array<i64: 16, 256>}]} {
    %c0 = arith.constant 0 : index
    %c0_0 = arith.constant 0 : index
    %0 = vector.load %arg1[%c0, %c0_0] : memref<256x32xf32, #tpu.memory_space<vmem>>, vector<256x32xf32>
    %1 = arith.truncf %0 : vector<256x32xf32> to vector<256x32xbf16>
    %c0_1 = arith.constant 0 : index
    %c0_2 = arith.constant 0 : index
    %2 = vector.load %arg2[%c0_1, %c0_2] : memref<32x128xbf16, #tpu.memory_space<vmem>>, vector<32x128xbf16>
    %cst = arith.constant dense<0.000000e+00> : vector<256x128xf32>
    %3 = tpu.matmul %1, %2, %cst {dimension_numbers = #tpu.dot_dimension_numbers<[1], [0], [0], [1], [0, 0, 1, 1], [], []>} : vector<256x32xbf16>, vector<32x128xbf16>, vector<256x128xf32> -> vector<256x128xf32>
    %c0_3 = arith.constant 0 : index
    %c0_4 = arith.constant 0 : index
    %4 = vector.load %arg3[%c0_3, %c0_4] : memref<1x128xf32, #tpu.memory_space<vmem>>, vector<1x128xf32>
    %5 = vector.broadcast %4 : vector<1x128xf32> to vector<256x128xf32>
    %6 = arith.addf %3, %5 : vector<256x128xf32>
    %cst_5 = arith.constant 0.000000e+00 : f32
    %7 = vector.broadcast %cst_5 : f32 to vector<256x128xf32>
    %8 = arith.maximumf %6, %7 : vector<256x128xf32>
    %9 = arith.truncf %8 : vector<256x128xf32> to vector<256x128xbf16>
    %c0_6 = arith.constant 0 : index
    %c0_7 = arith.constant 0 : index
    %10 = vector.load %arg4[%c0_6, %c0_7] : memref<128x128xbf16, #tpu.memory_space<vmem>>, vector<128x128xbf16>
    %cst_8 = arith.constant dense<0.000000e+00> : vector<256x128xf32>
    %11 = tpu.matmul %9, %10, %cst_8 {dimension_numbers = #tpu.dot_dimension_numbers<[1], [0], [0], [1], [0, 0, 1, 1], [], []>} : vector<256x128xbf16>, vector<128x128xbf16>, vector<256x128xf32> -> vector<256x128xf32>
    %c0_9 = arith.constant 0 : index
    %c0_10 = arith.constant 0 : index
    %12 = vector.load %arg5[%c0_9, %c0_10] : memref<1x128xf32, #tpu.memory_space<vmem>>, vector<1x128xf32>
    %13 = vector.broadcast %12 : vector<1x128xf32> to vector<256x128xf32>
    %14 = arith.addf %11, %13 : vector<256x128xf32>
    %cst_11 = arith.constant 0.000000e+00 : f32
    %15 = vector.broadcast %cst_11 : f32 to vector<256x128xf32>
    %16 = arith.maximumf %14, %15 : vector<256x128xf32>
    %17 = arith.truncf %16 : vector<256x128xf32> to vector<256x128xbf16>
    %c0_12 = arith.constant 0 : index
    %c0_13 = arith.constant 0 : index
    %18 = vector.load %arg6[%c0_12, %c0_13] : memref<128x128xbf16, #tpu.memory_space<vmem>>, vector<128x128xbf16>
    %cst_14 = arith.constant dense<0.000000e+00> : vector<256x128xf32>
    %19 = tpu.matmul %17, %18, %cst_14 {dimension_numbers = #tpu.dot_dimension_numbers<[1], [0], [0], [1], [0, 0, 1, 1], [], []>} : vector<256x128xbf16>, vector<128x128xbf16>, vector<256x128xf32> -> vector<256x128xf32>
    %c0_15 = arith.constant 0 : index
    %c0_16 = arith.constant 0 : index
    %20 = vector.load %arg7[%c0_15, %c0_16] : memref<1x128xf32, #tpu.memory_space<vmem>>, vector<1x128xf32>
    %21 = vector.broadcast %20 : vector<1x128xf32> to vector<256x128xf32>
    %22 = arith.addf %19, %21 : vector<256x128xf32>
    %cst_17 = arith.constant 0.000000e+00 : f32
    %23 = vector.broadcast %cst_17 : f32 to vector<256x128xf32>
    %24 = arith.maximumf %22, %23 : vector<256x128xf32>
    %25 = tpu.transpose %24, [1, 0] : vector<256x128xf32> -> vector<128x256xf32>
    %26 = arith.truncf %25 : vector<128x256xf32> to vector<128x256xbf16>
    %c0_18 = arith.constant 0 : index
    %c0_19 = arith.constant 0 : index
    %27 = vector.load %arg8[%c0_18, %c0_19] : memref<8x128xbf16, #tpu.memory_space<vmem>>, vector<8x128xbf16>
    %cst_20 = arith.constant dense<0.000000e+00> : vector<8x256xf32>
    %28 = tpu.matmul %27, %26, %cst_20 {dimension_numbers = #tpu.dot_dimension_numbers<[1], [0], [0], [1], [0, 0, 1, 1], [], []>} : vector<8x128xbf16>, vector<128x256xbf16>, vector<8x256xf32> -> vector<8x256xf32>
    %c0_21 = arith.constant 0 : index
    %c0_22 = arith.constant 0 : index
    %29 = vector.load %arg9[%c0_21, %c0_22] : memref<8x1xf32, #tpu.memory_space<vmem>>, vector<8x1xf32>
    %30 = vector.broadcast %29 : vector<8x1xf32> to vector<8x256xf32>
    %31 = arith.addf %28, %30 : vector<8x256xf32>
    %cst_23 = arith.constant dense<0xFF800000> : vector<256xf32>
    %32 = vector.multi_reduction <maximumf>, %31, %cst_23 [0] : vector<8x256xf32> to vector<256xf32>
    %33 = vector.shape_cast %32 : vector<256xf32> to vector<1x256xf32>
    %34 = vector.broadcast %33 : vector<1x256xf32> to vector<8x256xf32>
    %35 = arith.subf %31, %34 : vector<8x256xf32>
    %36 = math.exp %35 : vector<8x256xf32>
    %cst_24 = arith.constant dense<0.000000e+00> : vector<256xf32>
    %37 = vector.multi_reduction <add>, %36, %cst_24 [0] : vector<8x256xf32> to vector<256xf32>
    %38 = vector.shape_cast %37 : vector<256xf32> to vector<1x256xf32>
    %39 = vector.broadcast %38 : vector<1x256xf32> to vector<8x256xf32>
    %40 = arith.divf %36, %39 : vector<8x256xf32>
    %c0_25 = arith.constant 0 : index
    %c0_26 = arith.constant 0 : index
    %41 = vector.load %arg10[%c0_25, %c0_26] : memref<16x256xf32, #tpu.memory_space<vmem>>, vector<8x256xf32>
    tpu.vector_store %arg10[%c0_25, %c0_26], %31 {strides = array<i32>} : memref<16x256xf32, #tpu.memory_space<vmem>>, vector<8x256xf32>,
    %c8 = arith.constant 8 : index
    %c0_27 = arith.constant 0 : index
    %42 = vector.load %arg10[%c8, %c0_27] : memref<16x256xf32, #tpu.memory_space<vmem>>, vector<8x256xf32>
    tpu.vector_store %arg10[%c8, %c0_27], %40 {strides = array<i32>} : memref<16x256xf32, #tpu.memory_space<vmem>>, vector<8x256xf32>,
    return
  }
  func.func @transform_0(%arg0: i32) -> (i32, i32) {
    %c0_i32 = arith.constant 0 : i32
    %c0_i32_0 = arith.constant 0 : i32
    return %arg0, %c0_i32 : i32, i32
  }
  func.func @transform_1(%arg0: i32) -> (i32, i32) {
    %c0_i32 = arith.constant 0 : i32
    %c0_i32_0 = arith.constant 0 : i32
    %c0_i32_1 = arith.constant 0 : i32
    return %c0_i32, %c0_i32_0 : i32, i32
  }
  func.func @transform_2(%arg0: i32) -> (i32, i32) {
    %c0_i32 = arith.constant 0 : i32
    %c0_i32_0 = arith.constant 0 : i32
    %c0_i32_1 = arith.constant 0 : i32
    return %c0_i32, %c0_i32_0 : i32, i32
  }
  func.func @transform_3(%arg0: i32) -> (i32, i32) {
    %c0_i32 = arith.constant 0 : i32
    %c0_i32_0 = arith.constant 0 : i32
    %c0_i32_1 = arith.constant 0 : i32
    return %c0_i32, %c0_i32_0 : i32, i32
  }
  func.func @transform_4(%arg0: i32) -> (i32, i32) {
    %c0_i32 = arith.constant 0 : i32
    %c0_i32_0 = arith.constant 0 : i32
    %c0_i32_1 = arith.constant 0 : i32
    return %c0_i32, %c0_i32_0 : i32, i32
  }
  func.func @transform_5(%arg0: i32) -> (i32, i32) {
    %c0_i32 = arith.constant 0 : i32
    %c0_i32_0 = arith.constant 0 : i32
    %c0_i32_1 = arith.constant 0 : i32
    return %c0_i32, %c0_i32_0 : i32, i32
  }
  func.func @transform_6(%arg0: i32) -> (i32, i32) {
    %c0_i32 = arith.constant 0 : i32
    %c0_i32_0 = arith.constant 0 : i32
    %c0_i32_1 = arith.constant 0 : i32
    return %c0_i32, %c0_i32_0 : i32, i32
  }
  func.func @transform_7(%arg0: i32) -> (i32, i32) {
    %c0_i32 = arith.constant 0 : i32
    %c0_i32_0 = arith.constant 0 : i32
    %c0_i32_1 = arith.constant 0 : i32
    return %c0_i32, %c0_i32_0 : i32, i32
  }
  func.func @transform_8(%arg0: i32) -> (i32, i32) {
    %c0_i32 = arith.constant 0 : i32
    %c0_i32_0 = arith.constant 0 : i32
    %c0_i32_1 = arith.constant 0 : i32
    return %c0_i32, %c0_i32_0 : i32, i32
  }
  func.func @transform_9(%arg0: i32) -> (i32, i32) {
    %c0_i32 = arith.constant 0 : i32
    %c0_i32_0 = arith.constant 0 : i32
    return %c0_i32, %arg0 : i32, i32
  }
}

</mosaic_0001>

<bundles_post_ra>
// kernel: mlp_forward.1
= control target key start
LH: loop header
LB: loop body
LE: loop exit
PB: predicated region body
PF: predicated region fallthrough
CT: control target
= control target key end

     0   :  { %vm104_vm0 = vcmask 261120   ;;  %s1826_s1 = inlined_call_operand.vmem [shape: bf16[32,128], index: 1, kind: input, shape index: {}]   ;;  %s1827_s0 = inlined_call_operand.vmem [shape: f32[256,32], index: 0, kind: input, shape index: {}]   ;;  %s1828_s3 = inlined_call_operand.vmem [shape: bf16[128,128], index: 3, kind: input, shape index: {}]   ;;  %s1829_s5 = inlined_call_operand.vmem [shape: bf16[128,128], index: 5, kind: input, shape index: {}]   ;;  %s1830_s2 = inlined_call_operand.vmem [shape: f32[1,128], index: 2, kind: input, shape index: {}]   ;;  %s1831_s4 = inlined_call_operand.vmem [shape: f32[1,128], index: 4, kind: input, shape index: {}]   ;;  %s1832_s6 = inlined_call_operand.vmem [shape: f32[1,128], index: 6, kind: input, shape index: {}]   ;;  %s1833_s8 = inlined_call_operand.vmem [shape: f32[8,1], index: 8, kind: input, shape index: {}]   ;;  %s1834_s7 = inlined_call_operand.vmem [shape: bf16[8,128], index: 7, kind: input, shape index: {}]   ;;  %s1835_s9 = inlined_call_operand.vmem [shape: f32[16,256], index: 9, kind: output, shape index: {}]  }
   0x1   :  { %v1430_v0 = vld [vmem:[%s1826_s1] sm:$0xff]   ;;  %v1431_v1 = vld [vmem:[%s1826_s1 + $0x8] sm:$0xff]   ;;  %v35_v5 = vld [vmem:[%s1827_s0 + $0x10] sm:$0xff] }
   0x2   :  { %1179 = vmatprep.subr.bf16.mxu0 %v1430_v0  ;;  %v33_v2 = vld [vmem:[%s1827_s0] sm:$0xff]  ;;  %v34_v3 = vld [vmem:[%s1827_s0 + $0x8] sm:$0xff]  ;;  %1311 = vmatprep.subr.bf16.mxu1 %v1430_v0  ;;  %v36_v6 = vld [vmem:[%s1827_s0 + $0x18] sm:$0xff] }
   0x3   :  { %1180 = vmatpush3.bf16.msra.mxu0 %v1430_v0  ;;  %v65_v4 = vpack.c.bf16 %v34_v3, %v33_v2  ;;  %1313 = vmatpush3.bf16.msra.mxu1 %v1430_v0  ;;  %v37_v7 = vld [vmem:[%s1827_s0 + $0x20] sm:$0xff]  ;;  %v38_v8 = vld [vmem:[%s1827_s0 + $0x28] sm:$0xff]  ;;  %v66_v9 = vpack.c.bf16 %v36_v6, %v35_v5  ;;  %v51_v14 = vld [vmem:[%s1827_s0 + $0x90] sm:$0xff] }
   0x4   :  { %1181 = vmatprep.subr.bf16.mxu0 %v1431_v1  ;;  %1312 = vmatprep.subr.bf16.mxu1 %v1431_v1  ;;  %v67_v10 = vpack.c.bf16 %v38_v8, %v37_v7  ;;  %v49_v11 = vld [vmem:[%s1827_s0 + $0x80] sm:$0xff]  ;;  %v50_v12 = vld [vmem:[%s1827_s0 + $0x88] sm:$0xff]  ;;  %v52_v15 = vld [vmem:[%s1827_s0 + $0x98] sm:$0xff] }
   0x5   :  { %1183 = vmatprep.mubr.msk.bf16.mxu0 %vm104_vm0, %v65_v4  ;;  %v73_v13 = vpack.c.bf16 %v50_v12, %v49_v11  ;;  %v53_v16 = vld [vmem:[%s1827_s0 + $0xa0] sm:$0xff]  ;;  %v74_v17 = vpack.c.bf16 %v52_v15, %v51_v14  ;;  %v54_v18 = vld [vmem:[%s1827_s0 + $0xa8] sm:$0xff]  ;;  %v39_v19 = vld [vmem:[%s1827_s0 + $0x30] sm:$0xff] }
   0x6   :  { %v40_v20 = vld [vmem:[%s1827_s0 + $0x38] sm:$0xff]  ;;  %v41_v21 = vld [vmem:[%s1827_s0 + $0x40] sm:$0xff]  ;;  %v75_v22 = vpack.c.bf16 %v54_v18, %v53_v16  ;;  %v42_v23 = vld [vmem:[%s1827_s0 + $0x48] sm:$0xff] }
   0x7   :  { %1182 = vmatpush3.bf16.msra.mxu0 %v1431_v1  ;;  %1314 = vmatpush3.bf16.msra.mxu1 %v1431_v1  ;;  %v55_v24 = vld [vmem:[%s1827_s0 + $0xb0] sm:$0xff]  ;;  %v56_v25 = vld [vmem:[%s1827_s0 + $0xb8] sm:$0xff]  ;;  %v57_v26 = vld [vmem:[%s1827_s0 + $0xc0] sm:$0xff]  ;;  %v68_v29 = vpack.c.bf16 %v40_v20, %v39_v19  ;;  %v69_v31 = vpack.c.bf16 %v42_v23, %v41_v21 }
   0x8   :  { %1199 = vmatprep.mubr.msk.bf16.mxu1 %vm104_vm0, %v73_v13  ;;  %v58_v27 = vld [vmem:[%s1827_s0 + $0xc8] sm:$0xff]  ;;  %v1432_v28 = vld [vmem:[%s1828_s3] sm:$0xff]   ;;  %v76_v32 = vpack.c.bf16 %v56_v25, %v55_v24  ;;  %v43_v34 = vld [vmem:[%s1827_s0 + $0x50] sm:$0xff] }
   0x9   :  { %v1433_v30 = vld [vmem:[%s1828_s3 + $0x8] sm:$0xff]   ;;  %1215 = vmatprep.subr.bf16.mxu1 %v1432_v28  ;;  %v77_v33 = vpack.c.bf16 %v58_v27, %v57_v26  ;;  %v44_v35 = vld [vmem:[%s1827_s0 + $0x58] sm:$0xff]  ;;  %v1434_v36 = vld [vmem:[%s1828_s3 + $0x10] sm:$0xff]  }
   0xa   :  { %1184 = vmatmul.mubr.msk.bf16.vlgmr.msra.gmra.mrb[0].mxu0 %vm104_vm0, %v66_v9  ;;  %1200 = vmatmul.mubr.msk.bf16.vlgmr.msra.gmra.mrb[0].mxu1 %vm104_vm0, %v74_v17  ;;  %v45_v37 = vld [vmem:[%s1827_s0 + $0x60] sm:$0xff]  ;;  %v46_v38 = vld [vmem:[%s1827_s0 + $0x68] sm:$0xff]  ;;  %v59_v39 = vld [vmem:[%s1827_s0 + $0xd0] sm:$0xff]  ;;  %v70_v44 = vpack.c.bf16 %v44_v35, %v43_v34 }
   0xb   :  { %1187 = vmatprep.mubr.msk.bf16.mxu0 %vm104_vm0, %v67_v10  ;;  %1203 = vmatprep.mubr.msk.bf16.mxu1 %vm104_vm0, %v75_v22  ;;  %v60_v40 = vld [vmem:[%s1827_s0 + $0xd8] sm:$0xff]  ;;  %v61_v41 = vld [vmem:[%s1827_s0 + $0xe0] sm:$0xff]  ;;  %v62_v42 = vld [vmem:[%s1827_s0 + $0xe8] sm:$0xff]  ;;  %v71_v45 = vpack.c.bf16 %v46_v38, %v45_v37 }
   0xc   :  { %1216 = vmatpush3.bf16.msra.mxu1 %v1432_v28  ;;  %v1435_v43 = vld [vmem:[%s1828_s3 + $0x18] sm:$0xff]   ;;  %v78_v46 = vpack.c.bf16 %v60_v40, %v59_v39  ;;  %v79_v47 = vpack.c.bf16 %v62_v42, %v61_v41  ;;  %v1436_v48 = vld [vmem:[%s1828_s3 + $0x20] sm:$0xff]   ;;  %v47_v49 = vld [vmem:[%s1827_s0 + $0x70] sm:$0xff] }
   0xd   :  { %1217 = vmatprep.subr.bf16.mxu1 %v1433_v30  ;;  %v48_v50 = vld [vmem:[%s1827_s0 + $0x78] sm:$0xff]  ;;  %v63_v51 = vld [vmem:[%s1827_s0 + $0xf0] sm:$0xff]  ;;  %v1437_v53 = vld [vmem:[%s1828_s3 + $0x28] sm:$0xff]  }
   0xe   :  { %v64_v52 = vld [vmem:[%s1827_s0 + $0xf8] sm:$0xff]  ;;  %v72_v54 = vpack.c.bf16 %v48_v50, %v47_v49  ;;  %v1438_v56 = vld [vmem:[%s1828_s3 + $0x30] sm:$0xff]   ;;  %v1440_v58 = vld [vmem:[%s1829_s5] sm:$0xff]  }
   0xf   :  { %v80_v55 = vpack.c.bf16 %v64_v52, %v63_v51  ;;  %v1439_v57 = vld [vmem:[%s1828_s3 + $0x38] sm:$0xff]   ;;  %v1441_v59 = vld [vmem:[%s1829_s5 + $0x8] sm:$0xff]   ;;  %1263 = vmatprep.subr.bf16.mxu0 %v1440_v58  ;;  %v1442_v60 = vld [vmem:[%s1829_s5 + $0x10] sm:$0xff]  }
  0x10   :  { %1218 = vmatpush3.bf16.msra.mxu1 %v1433_v30  ;;  %1264 = vmatpush3.bf16.msra.mxu0 %v1440_v58  ;;  %v1443_v61 = vld [vmem:[%s1829_s5 + $0x18] sm:$0xff]   ;;  %v1444_v62 = vld [vmem:[%s1829_s5 + $0x20] sm:$0xff]   ;;  %v1445_v63 = vld [vmem:[%s1829_s5 + $0x28] sm:$0xff]  }
  0x11   :  { %1219 = vmatprep.subr.bf16.mxu1 %v1434_v36  ;;  %1265 = vmatprep.subr.bf16.mxu0 %v1441_v59  ;;  %v1670_v0 = vld [vmem:[%s1830_s2] ss:$0 sm:$0xff] }
  0x12   :  { %1188 = vmatmul.mubr.msk.bf16.gmra.mrb[4].mxu0 %vm104_vm0, %v68_v29  ;;  %1204 = vmatmul.mubr.msk.bf16.gmra.mrb[4].mxu1 %vm104_vm0, %v76_v32 }
  0x13   :  { %1191 = vmatprep.mubr.msk.bf16.mxu0 %vm104_vm0, %v69_v31  ;;  %1207 = vmatprep.mubr.msk.bf16.mxu1 %vm104_vm0, %v77_v33 }
  0x14   :  { %1220 = vmatpush3.bf16.msra.mxu1 %v1434_v36  ;;  %1266 = vmatpush3.bf16.msra.mxu0 %v1441_v59 }
  0x15   :  { %1221 = vmatprep.subr.bf16.mxu1 %v1435_v43  ;;  %1267 = vmatprep.subr.bf16.mxu0 %v1442_v60 }
  0x18   :  { %1222 = vmatpush3.bf16.msra.mxu1 %v1435_v43  ;;  %1268 = vmatpush3.bf16.msra.mxu0 %v1442_v60 }
  0x19   :  { %1223 = vmatprep.subr.bf16.mxu1 %v1436_v48  ;;  %1269 = vmatprep.subr.bf16.mxu0 %v1443_v61 }
  0x1a   :  { %1192 = vmatmul.mubr.msk.bf16.gmra.mrb[8].mxu0 %vm104_vm0, %v70_v44  ;;  %1208 = vmatmul.mubr.msk.bf16.gmra.mrb[8].mxu1 %vm104_vm0, %v78_v46 }
  0x1b   :  { %1195 = vmatprep.mubr.msk.bf16.mxu0 %vm104_vm0, %v71_v45  ;;  %1211 = vmatprep.mubr.msk.bf16.mxu1 %vm104_vm0, %v79_v47 }
  0x1c   :  { %1224 = vmatpush3.bf16.msra.mxu1 %v1436_v48  ;;  %1270 = vmatpush3.bf16.msra.mxu0 %v1443_v61 }
  0x1d   :  { %1225 = vmatprep.subr.bf16.mxu1 %v1437_v53  ;;  %1271 = vmatprep.subr.bf16.mxu0 %v1444_v62 }
  0x20   :  { %1226 = vmatpush3.bf16.msra.mxu1 %v1437_v53  ;;  %1272 = vmatpush3.bf16.msra.mxu0 %v1444_v62 }
  0x21   :  { %1227 = vmatprep.subr.bf16.mxu1 %v1438_v56  ;;  %1273 = vmatprep.subr.bf16.mxu0 %v1445_v63 }
  0x22   :  { %1196 = vmatmul.mubr.msk.bf16.gmra.mrb[12].mxu0 %vm104_vm0, %v72_v54  ;;  %1212 = vmatmul.mubr.msk.bf16.gmra.mrb[12].mxu1 %vm104_vm0, %v80_v55 }
  0x24   :  { %1228 = vmatpush3.bf16.msra.mxu1 %v1438_v56  ;;  %1274 = vmatpush3.bf16.msra.mxu0 %v1445_v63 }
  0x25   :  { %1229 = vmatprep.subr.bf16.mxu1 %v1439_v57 }
  0x28   :  { %1230 = vmatpush3.bf16.msra.mxu1 %v1439_v57 }
  0xdd   :  { %v1185_v1 = vpop.f32.mrb[0].mxu0  ;;  %v1201_v4 = vpop.f32.mrb[0].mxu1 }
  0xde   :  { %v196_v2 = vadd.f32 %v1185_v1, %v1670_v0  ;;  %v187_v3 = vpop.f32.mrb[1].mxu0  ;;  %v260_v7 = vadd.f32 %v1201_v4, %v1670_v0  ;;  %v251_v8 = vpop.f32.mrb[1].mxu1 }
  0xdf   :  { %v188_v5 = vadd.f32 %v1670_v0, %v187_v3  ;;  %v1186_v6 = vpop.f32.mrb[2].mxu0  ;;  %v252_v11 = vadd.f32 %v1670_v0, %v251_v8  ;;  %v1202_v12 = vpop.f32.mrb[2].mxu1 }
  0xe0   :  { %v199_v9 = vadd.f32 %v1186_v6, %v1670_v0  ;;  %v190_v10 = vpop.f32.mrb[3].mxu0  ;;  %v332_v14 = vmax.f32 %v260_v7, 0.0  ;;  %v263_v15 = vadd.f32 %v1202_v12, %v1670_v0  ;;  %v254_v16 = vpop.f32.mrb[3].mxu1  ;;  %v316_v17 = vmax.f32 %v196_v2, 0.0 }
  0xe1   :  { %v191_v13 = vadd.f32 %v1670_v0, %v190_v10  ;;  %v330_v19 = vmax.f32 %v252_v11, 0.0  ;;  %v255_v20 = vadd.f32 %v1670_v0, %v254_v16  ;;  %v314_v21 = vmax.f32 %v188_v5, 0.0 }
  0xe2   :  { %v317_v18 = vmax.f32 %v199_v9, 0.0  ;;  %v333_v23 = vmax.f32 %v263_v15, 0.0 }
  0xe3   :  { %v315_v22 = vmax.f32 %v191_v13, 0.0  ;;  %v331_v25 = vmax.f32 %v255_v20, 0.0 }
  0xe4   :  { %v347_v24 = vpack.c.bf16 %v317_v18, %v316_v17  ;;  %v1680_v28 = vpack.c.bf16 %v333_v23, %v332_v14 }
  0xe5   :  { %v346_v26 = vpack.c.bf16 %v315_v22, %v314_v21  ;;  %v1189_v27 = vpop.f32.mrb[4].mxu0  ;;  %v1683_v31 = vpack.c.bf16 %v331_v25, %v330_v19  ;;  %v1205_v32 = vpop.f32.mrb[4].mxu1 }
  0xe6   :  { %v212_v29 = vadd.f32 %v1189_v27, %v1670_v0  ;;  %v203_v30 = vpop.f32.mrb[5].mxu0  ;;  %v276_v35 = vadd.f32 %v1205_v32, %v1670_v0  ;;  %v267_v36 = vpop.f32.mrb[5].mxu1 }
  0xe7   :  { %v204_v33 = vadd.f32 %v1670_v0, %v203_v30  ;;  %v1190_v34 = vpop.f32.mrb[6].mxu0  ;;  %1231 = vmatprep.mubr.bf16.mxu1 %v346_v26  ;;  %v268_v39 = vadd.f32 %v1670_v0, %v267_v36  ;;  %v1206_v40 = vpop.f32.mrb[6].mxu1 }
  0xe8   :  { %v215_v37 = vadd.f32 %v1190_v34, %v1670_v0  ;;  %v206_v38 = vpop.f32.mrb[7].mxu0  ;;  %1232 = vmatmul.mubr.bf16.vlgmr.msra.gmra.mrb[16].mxu1 %v347_v24  ;;  %v336_v42 = vmax.f32 %v276_v35, 0.0  ;;  %v279_v43 = vadd.f32 %v1206_v40, %v1670_v0  ;;  %v270_v44 = vpop.f32.mrb[7].mxu1  ;;  %v320_v45 = vmax.f32 %v212_v29, 0.0 }
  0xe9   :  { %v207_v41 = vadd.f32 %v1670_v0, %v206_v38  ;;  %v334_v47 = vmax.f32 %v268_v39, 0.0  ;;  %v271_v48 = vadd.f32 %v1670_v0, %v270_v44  ;;  %v318_v49 = vmax.f32 %v204_v33, 0.0 }
  0xea   :  { %v321_v46 = vmax.f32 %v215_v37, 0.0  ;;  %v337_v51 = vmax.f32 %v279_v43, 0.0 }
  0xeb   :  { %v319_v50 = vmax.f32 %v207_v41, 0.0  ;;  %v335_v53 = vmax.f32 %v271_v48, 0.0 }
  0xec   :  { %v349_v52 = vpack.c.bf16 %v321_v46, %v320_v45  ;;  %v1692_v56 = vpack.c.bf16 %v337_v51, %v336_v42 }
  0xed   :  { %v348_v54 = vpack.c.bf16 %v319_v50, %v318_v49  ;;  %v1193_v55 = vpop.f32.mrb[8].mxu0  ;;  %v356_v59 = vpack.c.bf16 %v335_v53, %v334_v47  ;;  %v1209_v60 = vpop.f32.mrb[8].mxu1 }
  0xee   :  { %v228_v57 = vadd.f32 %v1193_v55, %v1670_v0  ;;  %v219_v58 = vpop.f32.mrb[9].mxu0  ;;  %v292_v63 = vadd.f32 %v1209_v60, %v1670_v0  ;;  %v283_v1 = vpop.f32.mrb[9].mxu1 }
  0xef   :  { %v220_v61 = vadd.f32 %v1670_v0, %v219_v58  ;;  %v1194_v62 = vpop.f32.mrb[10].mxu0  ;;  %1235 = vmatprep.mubr.bf16.mxu1 %v348_v54  ;;  %v284_v4 = vadd.f32 %v1670_v0, %v283_v1  ;;  %v1210_v5 = vpop.f32.mrb[10].mxu1 }
  0xf0   :  { %v231_v2 = vadd.f32 %v1194_v62, %v1670_v0  ;;  %v222_v3 = vpop.f32.mrb[11].mxu0  ;;  %1236 = vmatmul.mubr.bf16.gmra.mrb[20].mxu1 %v349_v52  ;;  %v340_v7 = vmax.f32 %v292_v63, 0.0  ;;  %v295_v8 = vadd.f32 %v1210_v5, %v1670_v0  ;;  %v286_v9 = vpop.f32.mrb[11].mxu1  ;;  %v324_v10 = vmax.f32 %v228_v57, 0.0  ;;  %v1447_v52 = vld [vmem:[%s1829_s5 + $0x38] sm:$0xff]  }
  0xf1   :  { %v223_v6 = vadd.f32 %v1670_v0, %v222_v3  ;;  %v338_v12 = vmax.f32 %v284_v4, 0.0  ;;  %v287_v13 = vadd.f32 %v1670_v0, %v286_v9  ;;  %v322_v14 = vmax.f32 %v220_v61, 0.0 }
  0xf2   :  { %v325_v11 = vmax.f32 %v231_v2, 0.0  ;;  %v341_v16 = vmax.f32 %v295_v8, 0.0 }
  0xf3   :  { %v323_v15 = vmax.f32 %v223_v6, 0.0  ;;  %v339_v18 = vmax.f32 %v287_v13, 0.0 }
  0xf4   :  { %v351_v17 = vpack.c.bf16 %v325_v11, %v324_v10  ;;  %v359_v21 = vpack.c.bf16 %v341_v16, %v340_v7 }
  0xf5   :  { %v350_v19 = vpack.c.bf16 %v323_v15, %v322_v14  ;;  %v1197_v20 = vpop.f32.mrb[12].mxu0  ;;  %v358_v24 = vpack.c.bf16 %v339_v18, %v338_v12  ;;  %v1213_v25 = vpop.f32.mrb[12].mxu1 }
  0xf6   :  { %v244_v22 = vadd.f32 %v1197_v20, %v1670_v0  ;;  %v235_v23 = vpop.f32.mrb[13].mxu0  ;;  %v308_v29 = vadd.f32 %v1213_v25, %v1670_v0  ;;  %v299_v30 = vpop.f32.mrb[13].mxu1 }
  0xf7   :  { %v236_v26 = vadd.f32 %v1670_v0, %v235_v23  ;;  %v1198_v27 = vpop.f32.mrb[14].mxu0  ;;  %1239 = vmatprep.mubr.bf16.mxu1 %v350_v19  ;;  %v300_v34 = vadd.f32 %v1670_v0, %v299_v30  ;;  %v1214_v35 = vpop.f32.mrb[14].mxu1 }
  0xf8   :  { %v247_v32 = vadd.f32 %v1198_v27, %v1670_v0  ;;  %v238_v33 = vpop.f32.mrb[15].mxu0  ;;  %1240 = vmatmul.mubr.bf16.gmra.mrb[24].mxu1 %v351_v17  ;;  %v344_v37 = vmax.f32 %v308_v29, 0.0  ;;  %v311_v38 = vadd.f32 %v1214_v35, %v1670_v0  ;;  %v302_v39 = vpop.f32.mrb[15].mxu1  ;;  %v328_v40 = vmax.f32 %v244_v22, 0.0 }
  0xf9   :  { %v239_v36 = vadd.f32 %v1670_v0, %v238_v33  ;;  %v342_v42 = vmax.f32 %v300_v34, 0.0  ;;  %v303_v43 = vadd.f32 %v1670_v0, %v302_v39  ;;  %v326_v44 = vmax.f32 %v236_v26, 0.0  ;;  %v1446_v0 = vld [vmem:[%s1829_s5 + $0x30] sm:$0xff]  }
  0xfa   :  { %v329_v41 = vmax.f32 %v247_v32, 0.0  ;;  %v345_v46 = vmax.f32 %v311_v38, 0.0  ;;  %1275 = vmatprep.subr.bf16.mxu0 %v1446_v0 }
  0xfb   :  { %v327_v45 = vmax.f32 %v239_v36, 0.0  ;;  %v343_v48 = vmax.f32 %v303_v43, 0.0  ;;  %1276 = vmatpush3.bf16.msra.mxu0 %v1446_v0 }
  0xfc   :  { %v353_v47 = vpack.c.bf16 %v329_v41, %v328_v40  ;;  %v361_v50 = vpack.c.bf16 %v345_v46, %v344_v37  ;;  %1277 = vmatprep.subr.bf16.mxu0 %v1447_v52 }
  0xfd   :  { %v352_v49 = vpack.c.bf16 %v327_v45, %v326_v44  ;;  %v360_v51 = vpack.c.bf16 %v343_v48, %v342_v42 }
  0xff   :  { %1243 = vmatprep.mubr.bf16.mxu1 %v352_v49  ;;  %1278 = vmatpush3.bf16.msra.mxu0 %v1447_v52 }
 0x100   :  { %1244 = vmatmul.mubr.bf16.gmra.mrb[28].mxu1 %v353_v47 }
 0x101   :  { %1247 = vmatprep.mubr.bf16.mxu1 %v1683_v31 }
 0x108   :  { %1248 = vmatmul.mubr.bf16.gmra.mrb[32].mxu1 %v1680_v28  ;;  %v1722_v28 = vld [vmem:[%s1831_s4] ss:$0 sm:$0xff] }
 0x109   :  { %1251 = vmatprep.mubr.bf16.mxu1 %v356_v59 }
 0x110   :  { %1252 = vmatmul.mubr.bf16.gmra.mrb[36].mxu1 %v1692_v56 }
 0x111   :  { %1255 = vmatprep.mubr.bf16.mxu1 %v358_v24 }
 0x118   :  { %1256 = vmatmul.mubr.bf16.gmra.mrb[40].mxu1 %v359_v21 }
 0x119   :  { %1259 = vmatprep.mubr.bf16.mxu1 %v360_v51 }
 0x120   :  { %1260 = vmatmul.mubr.bf16.gmra.mrb[44].mxu1 %v361_v50 }
 0x1bb   :  { %v1233_v31 = vpop.f32.mrb[16].mxu1 }
 0x1bc   :  { %v476_v53 = vadd.f32 %v1233_v31, %v1722_v28  ;;  %v467_v54 = vpop.f32.mrb[17].mxu1 }
 0x1bd   :  { %v468_v55 = vadd.f32 %v1722_v28, %v467_v54  ;;  %v1234_v56 = vpop.f32.mrb[18].mxu1 }
 0x1be   :  { %v479_v57 = vadd.f32 %v1234_v56, %v1722_v28  ;;  %v470_v58 = vpop.f32.mrb[19].mxu1  ;;  %v596_v60 = vmax.f32 %v476_v53, 0.0 }
 0x1bf   :  { %v471_v59 = vadd.f32 %v1722_v28, %v470_v58  ;;  %v594_v62 = vmax.f32 %v468_v55, 0.0 }
 0x1c0   :  { %v597_v61 = vmax.f32 %v479_v57, 0.0 }
 0x1c1   :  { %v595_v63 = vmax.f32 %v471_v59, 0.0 }
 0x1c2   :  { %v627_v1 = vpack.c.bf16 %v597_v61, %v596_v60 }
 0x1c3   :  { %v626_v2 = vpack.c.bf16 %v595_v63, %v594_v62  ;;  %v1237_v3 = vpop.f32.mrb[20].mxu1 }
 0x1c4   :  { %v492_v4 = vadd.f32 %v1237_v3, %v1722_v28  ;;  %v483_v5 = vpop.f32.mrb[21].mxu1 }
 0x1c5   :  { %v484_v6 = vadd.f32 %v1722_v28, %v483_v5  ;;  %v1238_v7 = vpop.f32.mrb[22].mxu1  ;;  %1279 = vmatprep.mubr.bf16.mxu0 %v626_v2 }
 0x1c6   :  { %v495_v8 = vadd.f32 %v1238_v7, %v1722_v28  ;;  %v486_v9 = vpop.f32.mrb[23].mxu1  ;;  %1280 = vmatmul.mubr.bf16.vlgmr.msra.gmra.mrb[16].mxu0 %v627_v1  ;;  %v600_v11 = vmax.f32 %v492_v4, 0.0 }
 0x1c7   :  { %v487_v10 = vadd.f32 %v1722_v28, %v486_v9  ;;  %v598_v13 = vmax.f32 %v484_v6, 0.0 }
 0x1c8   :  { %v601_v12 = vmax.f32 %v495_v8, 0.0 }
 0x1c9   :  { %v599_v14 = vmax.f32 %v487_v10, 0.0 }
 0x1ca   :  { %v629_v15 = vpack.c.bf16 %v601_v12, %v600_v11 }
 0x1cb   :  { %v628_v16 = vpack.c.bf16 %v599_v14, %v598_v13  ;;  %v1241_v17 = vpop.f32.mrb[24].mxu1 }
 0x1cc   :  { %v508_v18 = vadd.f32 %v1241_v17, %v1722_v28  ;;  %v499_v19 = vpop.f32.mrb[25].mxu1 }
 0x1cd   :  { %v500_v20 = vadd.f32 %v1722_v28, %v499_v19  ;;  %v1242_v21 = vpop.f32.mrb[26].mxu1  ;;  %1283 = vmatprep.mubr.bf16.mxu0 %v628_v16 }
 0x1ce   :  { %v511_v22 = vadd.f32 %v1242_v21, %v1722_v28  ;;  %v502_v23 = vpop.f32.mrb[27].mxu1  ;;  %1284 = vmatmul.mubr.bf16.gmra.mrb[20].mxu0 %v629_v15  ;;  %v604_v25 = vmax.f32 %v508_v18, 0.0 }
 0x1cf   :  { %v503_v24 = vadd.f32 %v1722_v28, %v502_v23  ;;  %v602_v27 = vmax.f32 %v500_v20, 0.0 }
 0x1d0   :  { %v605_v26 = vmax.f32 %v511_v22, 0.0 }
 0x1d1   :  { %v603_v29 = vmax.f32 %v503_v24, 0.0 }
 0x1d2   :  { %v631_v30 = vpack.c.bf16 %v605_v26, %v604_v25 }
 0x1d3   :  { %v630_v32 = vpack.c.bf16 %v603_v29, %v602_v27  ;;  %v1245_v33 = vpop.f32.mrb[28].mxu1 }
 0x1d4   :  { %v524_v34 = vadd.f32 %v1245_v33, %v1722_v28  ;;  %v515_v35 = vpop.f32.mrb[29].mxu1 }
 0x1d5   :  { %v516_v36 = vadd.f32 %v1722_v28, %v515_v35  ;;  %v1246_v37 = vpop.f32.mrb[30].mxu1  ;;  %1287 = vmatprep.mubr.bf16.mxu0 %v630_v32 }
 0x1d6   :  { %v527_v38 = vadd.f32 %v1246_v37, %v1722_v28  ;;  %v518_v39 = vpop.f32.mrb[31].mxu1  ;;  %1288 = vmatmul.mubr.bf16.gmra.mrb[24].mxu0 %v631_v30  ;;  %v608_v41 = vmax.f32 %v524_v34, 0.0 }
 0x1d7   :  { %v519_v40 = vadd.f32 %v1722_v28, %v518_v39  ;;  %v606_v43 = vmax.f32 %v516_v36, 0.0 }
 0x1d8   :  { %v609_v42 = vmax.f32 %v527_v38, 0.0 }
 0x1d9   :  { %v607_v44 = vmax.f32 %v519_v40, 0.0 }
 0x1da   :  { %v633_v45 = vpack.c.bf16 %v609_v42, %v608_v41 }
 0x1db   :  { %v632_v46 = vpack.c.bf16 %v607_v44, %v606_v43  ;;  %v1249_v47 = vpop.f32.mrb[32].mxu1 }
 0x1dc   :  { %v540_v48 = vadd.f32 %v1249_v47, %v1722_v28  ;;  %v531_v49 = vpop.f32.mrb[33].mxu1 }
 0x1dd   :  { %v532_v50 = vadd.f32 %v1722_v28, %v531_v49  ;;  %v1250_v51 = vpop.f32.mrb[34].mxu1  ;;  %1291 = vmatprep.mubr.bf16.mxu0 %v632_v46 }
 0x1de   :  { %v543_v0 = vadd.f32 %v1250_v51, %v1722_v28  ;;  %v534_v52 = vpop.f32.mrb[35].mxu1  ;;  %1292 = vmatmul.mubr.bf16.gmra.mrb[28].mxu0 %v633_v45  ;;  %v612_v53 = vmax.f32 %v540_v48, 0.0 }
 0x1df   :  { %v535_v31 = vadd.f32 %v1722_v28, %v534_v52  ;;  %v610_v55 = vmax.f32 %v532_v50, 0.0 }
 0x1e0   :  { %v613_v54 = vmax.f32 %v543_v0, 0.0 }
 0x1e1   :  { %v611_v56 = vmax.f32 %v535_v31, 0.0 }
 0x1e2   :  { %v635_v57 = vpack.c.bf16 %v613_v54, %v612_v53  ;;  %v1769_v53 = vld [vmem:[%s1832_s6] ss:$0 sm:$0xff] }
 0x1e3   :  { %v634_v58 = vpack.c.bf16 %v611_v56, %v610_v55  ;;  %v1253_v59 = vpop.f32.mrb[36].mxu1 }
 0x1e4   :  { %v556_v60 = vadd.f32 %v1253_v59, %v1722_v28  ;;  %v547_v61 = vpop.f32.mrb[37].mxu1 }
 0x1e5   :  { %v548_v62 = vadd.f32 %v1722_v28, %v547_v61  ;;  %v1254_v63 = vpop.f32.mrb[38].mxu1  ;;  %1295 = vmatprep.mubr.bf16.mxu0 %v634_v58 }
 0x1e6   :  { %v616_v1 = vmax.f32 %v556_v60, 0.0  ;;  %v559_v2 = vadd.f32 %v1254_v63, %v1722_v28  ;;  %v550_v3 = vpop.f32.mrb[39].mxu1  ;;  %1296 = vmatmul.mubr.bf16.gmra.mrb[32].mxu0 %v635_v57 }
 0x1e7   :  { %v614_v4 = vmax.f32 %v548_v62, 0.0  ;;  %v551_v5 = vadd.f32 %v1722_v28, %v550_v3 }
 0x1e8   :  { %v617_v6 = vmax.f32 %v559_v2, 0.0 }
 0x1e9   :  { %v615_v7 = vmax.f32 %v551_v5, 0.0 }
 0x1ea   :  { %v637_v8 = vpack.c.bf16 %v617_v6, %v616_v1 }
 0x1eb   :  { %v636_v9 = vpack.c.bf16 %v615_v7, %v614_v4  ;;  %v1257_v10 = vpop.f32.mrb[40].mxu1 }
 0x1ec   :  { %v572_v11 = vadd.f32 %v1257_v10, %v1722_v28  ;;  %v563_v12 = vpop.f32.mrb[41].mxu1 }
 0x1ed   :  { %v564_v13 = vadd.f32 %v1722_v28, %v563_v12  ;;  %v1258_v14 = vpop.f32.mrb[42].mxu1  ;;  %1299 = vmatprep.mubr.bf16.mxu0 %v636_v9 }
 0x1ee   :  { %v620_v15 = vmax.f32 %v572_v11, 0.0  ;;  %v575_v16 = vadd.f32 %v1258_v14, %v1722_v28  ;;  %v566_v17 = vpop.f32.mrb[43].mxu1  ;;  %1300 = vmatmul.mubr.bf16.gmra.mrb[36].mxu0 %v637_v8 }
 0x1ef   :  { %v618_v18 = vmax.f32 %v564_v13, 0.0  ;;  %v567_v19 = vadd.f32 %v1722_v28, %v566_v17 }
 0x1f0   :  { %v621_v20 = vmax.f32 %v575_v16, 0.0 }
 0x1f1   :  { %v619_v21 = vmax.f32 %v567_v19, 0.0 }
 0x1f2   :  { %v639_v22 = vpack.c.bf16 %v621_v20, %v620_v15 }
 0x1f3   :  { %v638_v23 = vpack.c.bf16 %v619_v21, %v618_v18  ;;  %v1261_v24 = vpop.f32.mrb[44].mxu1 }
 0x1f4   :  { %v588_v25 = vadd.f32 %v1261_v24, %v1722_v28  ;;  %v579_v26 = vpop.f32.mrb[45].mxu1 }
 0x1f5   :  { %v580_v27 = vadd.f32 %v1722_v28, %v579_v26  ;;  %v1262_v29 = vpop.f32.mrb[46].mxu1  ;;  %1303 = vmatprep.mubr.bf16.mxu0 %v638_v23 }
 0x1f6   :  { %v624_v30 = vmax.f32 %v588_v25, 0.0  ;;  %v591_v32 = vadd.f32 %v1262_v29, %v1722_v28  ;;  %v582_v33 = vpop.f32.mrb[47].mxu1  ;;  %1304 = vmatmul.mubr.bf16.gmra.mrb[40].mxu0 %v639_v22 }
 0x1f7   :  { %v622_v34 = vmax.f32 %v580_v27, 0.0  ;;  %v583_v35 = vadd.f32 %v1722_v28, %v582_v33 }
 0x1f8   :  { %v625_v36 = vmax.f32 %v591_v32, 0.0 }
 0x1f9   :  { %v623_v37 = vmax.f32 %v583_v35, 0.0 }
 0x1fa   :  { %v641_v38 = vpack.c.bf16 %v625_v36, %v624_v30 }
 0x1fb   :  { %v640_v39 = vpack.c.bf16 %v623_v37, %v622_v34 }
 0x1fd   :  { %1307 = vmatprep.mubr.bf16.mxu0 %v640_v39 }
 0x1fe   :  { %1308 = vmatmul.mubr.bf16.gmra.mrb[44].mxu0 %v641_v38 }
 0x299   :  { %v1281_v40 = vpop.f32.mrb[16].mxu0 }
 0x29a   :  { %v747_v41 = vpop.f32.mrb[17].mxu0  ;;  %v756_v54 = vadd.f32 %v1281_v40, %v1769_v53 }
 0x29b   :  { %v1282_v42 = vpop.f32.mrb[18].mxu0  ;;  %v748_v55 = vadd.f32 %v1769_v53, %v747_v41 }
 0x29c   :  { %v750_v43 = vpop.f32.mrb[19].mxu0  ;;  %v759_v57 = vadd.f32 %v1282_v42, %v1769_v53  ;;  %v876_v63 = vmax.f32 %v756_v54, 0.0 }
 0x29d   :  { %v751_v60 = vadd.f32 %v1769_v53, %v750_v43  ;;  %v874_v4 = vmax.f32 %v748_v55, 0.0 }
 0x29e   :  { %v877_v7 = vmax.f32 %v759_v57, 0.0 }
 0x29f   :  { %v875_v10 = vmax.f32 %v751_v60, 0.0 }
 0x2a1   :  { %v1285_v44 = vpop.f32.mrb[20].mxu0 }
 0x2a2   :  { %v763_v45 = vpop.f32.mrb[21].mxu0  ;;  %v772_v13 = vadd.f32 %v1285_v44, %v1769_v53 }
 0x2a3   :  { %v1286_v46 = vpop.f32.mrb[22].mxu0  ;;  %v764_v15 = vadd.f32 %v1769_v53, %v763_v45 }
 0x2a4   :  { %v766_v47 = vpop.f32.mrb[23].mxu0  ;;  %v775_v18 = vadd.f32 %v1286_v46, %v1769_v53  ;;  %v880_v24 = vmax.f32 %v772_v13, 0.0 }
 0x2a5   :  { %v767_v21 = vadd.f32 %v1769_v53, %v766_v47  ;;  %v878_v29 = vmax.f32 %v764_v15, 0.0 }
 0x2a6   :  { %v881_v33 = vmax.f32 %v775_v18, 0.0 }
 0x2a7   :  { %v879_v36 = vmax.f32 %v767_v21, 0.0 }
 0x2a9   :  { %v1289_v48 = vpop.f32.mrb[24].mxu0 }
 0x2aa   :  { %v779_v49 = vpop.f32.mrb[25].mxu0  ;;  %v788_v39 = vadd.f32 %v1289_v48, %v1769_v53 }
 0x2ab   :  { %v1290_v50 = vpop.f32.mrb[26].mxu0  ;;  %v780_v41 = vadd.f32 %v1769_v53, %v779_v49 }
 0x2ac   :  { %v1756_v51 = vpop.f32.mrb[27].mxu0  ;;  %v791_v44 = vadd.f32 %v1290_v50, %v1769_v53 }
 0x2ad   :  { %v783_v47 = vadd.f32 %v1769_v53, %v1756_v51  ;;  %v882_v49 = vmax.f32 %v780_v41, 0.0 }
 0x2ae   :  { %v885_v50 = vmax.f32 %v791_v44, 0.0 }
 0x2b1   :  { %v1758_v28 = vpop.f32.mrb[28].mxu0 }
 0x2b2   :  { %v1760_v0 = vpop.f32.mrb[29].mxu0  ;;  %v804_v51 = vadd.f32 %v1758_v28, %v1769_v53 }
 0x2b3   :  { %v1762_v52 = vpop.f32.mrb[30].mxu0 }
 0x2b4   :  { %v1764_v31 = vpop.f32.mrb[31].mxu0  ;;  %v888_v28 = vmax.f32 %v804_v51, 0.0 }
 0x2b9   :  { %v1297_v56 = vpop.f32.mrb[32].mxu0 }
 0x2ba   :  { %v820_v58 = vadd.f32 %v1297_v56, %v1769_v53  ;;  %v811_v59 = vpop.f32.mrb[33].mxu0  ;;  %v884_v56 = vmax.f32 %v788_v39, 0.0 }
 0x2bb   :  { %v812_v61 = vadd.f32 %v1769_v53, %v811_v59  ;;  %v1298_v62 = vpop.f32.mrb[34].mxu0 }
 0x2bc   :  { %v892_v1 = vmax.f32 %v820_v58, 0.0  ;;  %v823_v2 = vadd.f32 %v1298_v62, %v1769_v53  ;;  %v814_v3 = vpop.f32.mrb[35].mxu0 }
 0x2bd   :  { %v890_v5 = vmax.f32 %v812_v61, 0.0  ;;  %v815_v6 = vadd.f32 %v1769_v53, %v814_v3 }
 0x2be   :  { %v893_v8 = vmax.f32 %v823_v2, 0.0  ;;  %v1320_v9 = vpack.i.bf16 %v876_v63, %v892_v1  ;;  %v883_v63 = vmax.f32 %v783_v47, 0.0 }
 0x2bf   :  { %v891_v11 = vmax.f32 %v815_v6, 0.0  ;;  %v1316_v12 = vpack.i.bf16 %v874_v4, %v890_v5  ;;  %v796_v4 = vadd.f32 %v1769_v53, %v1760_v0 }
 0x2c0   :  { %v1322_v14 = vpack.i.bf16 %v877_v7, %v893_v8  ;;  %v807_v7 = vadd.f32 %v1762_v52, %v1769_v53 }
 0x2c1   :  { %v1301_v16 = vpop.f32.mrb[36].mxu0  ;;  %1317 = vxpose.xlu0.b32.start [1/16] %v1316_v12, 128  ;;  %v1318_v17 = vpack.i.bf16 %v875_v10, %v891_v11  ;;  %v799_v10 = vadd.f32 %v1769_v53, %v1764_v31  ;;  %v886_v15 = vmax.f32 %v796_v4, 0.0 }
 0x2c2   :  { %v836_v19 = vadd.f32 %v1301_v16, %v1769_v53  ;;  %v827_v20 = vpop.f32.mrb[37].mxu0  ;;  %v889_v52 = vmax.f32 %v807_v7, 0.0 }
 0x2c3   :  { %v828_v22 = vadd.f32 %v1769_v53, %v827_v20  ;;  %v1302_v23 = vpop.f32.mrb[38].mxu0  ;;  %v887_v20 = vmax.f32 %v799_v10, 0.0 }
 0x2c4   :  { %v896_v25 = vmax.f32 %v836_v19, 0.0  ;;  %v839_v26 = vadd.f32 %v1302_v23, %v1769_v53  ;;  %v830_v27 = vpop.f32.mrb[39].mxu0 }
 0x2c5   :  { %v894_v30 = vmax.f32 %v828_v22, 0.0  ;;  %v831_v32 = vadd.f32 %v1769_v53, %v830_v27  ;;  %1319 = vxpose.xlu0.b32.cont [2/16] %v1318_v17, 128 }
 0x2c6   :  { %v897_v34 = vmax.f32 %v839_v26, 0.0  ;;  %v1328_v35 = vpack.i.bf16 %v880_v24, %v896_v25  ;;  %v987_v24 = vld [vmem:[%s1833_s8] sm:$0xff] }
 0x2c7   :  { %v895_v37 = vmax.f32 %v831_v32, 0.0  ;;  %v1324_v38 = vpack.i.bf16 %v878_v29, %v894_v30 }
 0x2c8   :  { %v1330_v40 = vpack.i.bf16 %v881_v33, %v897_v34 }
 0x2c9   :  { %v1305_v42 = vpop.f32.mrb[40].mxu0  ;;  %1321 = vxpose.xlu0.b32.cont [3/16] %v1320_v9, 128  ;;  %v1326_v43 = vpack.i.bf16 %v879_v36, %v895_v37 }
 0x2ca   :  { %v852_v45 = vadd.f32 %v1305_v42, %v1769_v53  ;;  %v843_v46 = vpop.f32.mrb[41].mxu0 }
 0x2cb   :  { %v844_v54 = vadd.f32 %v1769_v53, %v843_v46  ;;  %v1306_v55 = vpop.f32.mrb[42].mxu0 }
 0x2cc   :  { %v900_v57 = vmax.f32 %v852_v45, 0.0  ;;  %v855_v48 = vadd.f32 %v1306_v55, %v1769_v53  ;;  %v846_v58 = vpop.f32.mrb[43].mxu0 }
 0x2cd   :  { %v898_v59 = vmax.f32 %v844_v54, 0.0  ;;  %v847_v60 = vadd.f32 %v1769_v53, %v846_v58  ;;  %1323 = vxpose.xlu0.b32.cont [4/16] %v1322_v14, 128 }
 0x2ce   :  { %v901_v61 = vmax.f32 %v855_v48, 0.0  ;;  %v1336_v62 = vpack.i.bf16 %v884_v56, %v900_v57 }
 0x2cf   :  { %v899_v1 = vmax.f32 %v847_v60, 0.0  ;;  %v1332_v2 = vpack.i.bf16 %v882_v49, %v898_v59 }
 0x2d0   :  { %v1338_v3 = vpack.i.bf16 %v885_v50, %v901_v61 }
 0x2d1   :  { %v1309_v5 = vpop.f32.mrb[44].mxu0  ;;  %1325 = vxpose.xlu0.b32.cont [5/16] %v1324_v38, 128  ;;  %v1334_v6 = vpack.i.bf16 %v883_v63, %v899_v1 }
 0x2d2   :  { %v868_v8 = vadd.f32 %v1309_v5, %v1769_v53  ;;  %v859_v9 = vpop.f32.mrb[45].mxu0 }
 0x2d3   :  { %v860_v11 = vadd.f32 %v1769_v53, %v859_v9  ;;  %v1310_v12 = vpop.f32.mrb[46].mxu0 }
 0x2d4   :  { %v904_v13 = vmax.f32 %v868_v8, 0.0  ;;  %v871_v14 = vadd.f32 %v1310_v12, %v1769_v53  ;;  %v862_v0 = vpop.f32.mrb[47].mxu0 }
 0x2d5   :  { %v902_v16 = vmax.f32 %v860_v11, 0.0  ;;  %v863_v17 = vadd.f32 %v1769_v53, %v862_v0  ;;  %1327 = vxpose.xlu0.b32.cont [6/16] %v1326_v43, 128  ;;  %v1456_v53 = vmov 0  }
 0x2d6   :  { %v905_v18 = vmax.f32 %v871_v14, 0.0  ;;  %v1344_v19 = vpack.i.bf16 %v888_v28, %v904_v13  ;;  %1025 = vmatprep.mubr.bf16.mxu1 %v1456_v53  ;;  %1428 = vset.pattern.permute.xlu1 %v1456_v53 }
 0x2d7   :  { %v903_v21 = vmax.f32 %v863_v17, 0.0  ;;  %v1340_v22 = vpack.i.bf16 %v886_v15, %v902_v16  ;;  %990 = vperm.xlu1 %1428, %v987_v24  }
 0x2d8   :  { %v1346_v31 = vpack.i.bf16 %v889_v52, %v905_v18 }
 0x2d9   :  { %1329 = vxpose.xlu0.b32.cont [7/16] %v1328_v35, 128  ;;  %v1342_v23 = vpack.i.bf16 %v887_v20, %v903_v21 }
 0x2dd   :  { %1331 = vxpose.xlu0.b32.cont [8/16] %v1330_v40, 128 }
 0x2e1   :  { %1333 = vxpose.xlu0.b32.cont [9/16] %v1332_v2, 128 }
 0x2e5   :  { %1335 = vxpose.xlu0.b32.cont [10/16] %v1334_v6, 128 }
 0x2e9   :  { %1337 = vxpose.xlu0.b32.cont [11/16] %v1336_v62, 128 }
 0x2ed   :  { %1339 = vxpose.xlu0.b32.cont [12/16] %v1338_v3, 128 }
 0x2f1   :  { %1341 = vxpose.xlu0.b32.cont [13/16] %v1340_v22, 128 }
 0x2f5   :  { %1343 = vxpose.xlu0.b32.cont [14/16] %v1342_v23, 128 }
 0x2f9   :  { %1345 = vxpose.xlu0.b32.cont [15/16] %v1344_v19, 128 }
 0x2fd   :  { %1347 = vxpose.xlu0.b32.end [16/16] %v1346_v31, 128 }
 0x326   :  { %1429 = vset.pattern.permute.xlu0 %v1456_v53 }
 0x341   :  { %v1348_v25 = vpop.trf.xlu0 }
 0x342   :  { %v1352_v26 = vunpack.i.h.bf16 %v1348_v25  ;;  %v1349_v27 = vunpack.i.l.bf16 %v1348_v25  ;;  %v986_v25 = vld [vmem:[%s1834_s7] sm:$0xf] }
 0x345   :  { %v1353_v29 = vpop.trf.xlu0 }
 0x346   :  { %v1357_v30 = vunpack.i.h.bf16 %v1353_v29  ;;  %v1354_v32 = vunpack.i.l.bf16 %v1353_v29 }
 0x348   :  { %v971_v33 = vpack.c.bf16 %v1354_v32, %v1349_v27  ;;  %v970_v34 = vpack.c.bf16 %v1357_v30, %v1352_v26 }
 0x349   :  { %v1358_v35 = vpop.trf.xlu0 }
 0x34a   :  { %993 = vmatprep.subr.bf16.mxu1 %v971_v33  ;;  %v1362_v36 = vunpack.i.h.bf16 %v1358_v35  ;;  %v1359_v37 = vunpack.i.l.bf16 %v1358_v35 }
 0x34b   :  { %994 = vmatpush1.bf16.msra.mxu1 %v970_v34 }
 0x34d   :  { %v1363_v38 = vpop.trf.xlu0 }
 0x34e   :  { %v1367_v39 = vunpack.i.h.bf16 %v1363_v38  ;;  %v1364_v40 = vunpack.i.l.bf16 %v1363_v38 }
 0x350   :  { %v973_v41 = vpack.c.bf16 %v1364_v40, %v1359_v37  ;;  %v972_v42 = vpack.c.bf16 %v1367_v39, %v1362_v36 }
 0x351   :  { %v1368_v43 = vpop.trf.xlu0 }
 0x352   :  { %995 = vmatprep.subr.bf16.mxu1 %v973_v41  ;;  %v1372_v44 = vunpack.i.h.bf16 %v1368_v43  ;;  %v1369_v45 = vunpack.i.l.bf16 %v1368_v43 }
 0x353   :  { %996 = vmatpush1.bf16.msra.mxu1 %v972_v42 }
 0x355   :  { %v1373_v46 = vpop.trf.xlu0 }
 0x356   :  { %v1377_v47 = vunpack.i.h.bf16 %v1373_v46  ;;  %v1374_v54 = vunpack.i.l.bf16 %v1373_v46  ;;  %v991_v26 = vpop.permute.xlu1 %990 }
 0x358   :  { %v975_v55 = vpack.c.bf16 %v1374_v54, %v1369_v45  ;;  %v974_v56 = vpack.c.bf16 %v1377_v47, %v1372_v44 }
 0x359   :  { %v1378_v57 = vpop.trf.xlu0 }
 0x35a   :  { %997 = vmatprep.subr.bf16.mxu1 %v975_v55  ;;  %v1382_v48 = vunpack.i.h.bf16 %v1378_v57  ;;  %v1379_v58 = vunpack.i.l.bf16 %v1378_v57 }
 0x35b   :  { %998 = vmatpush1.bf16.msra.mxu1 %v974_v56 }
 0x35d   :  { %v1383_v49 = vpop.trf.xlu0 }
 0x35e   :  { %v1387_v59 = vunpack.i.h.bf16 %v1383_v49  ;;  %v1384_v60 = vunpack.i.l.bf16 %v1383_v49 }
 0x360   :  { %v977_v50 = vpack.c.bf16 %v1384_v60, %v1379_v58  ;;  %v976_v61 = vpack.c.bf16 %v1387_v59, %v1382_v48 }
 0x361   :  { %v1388_v62 = vpop.trf.xlu0 }
 0x362   :  { %999 = vmatprep.subr.bf16.mxu1 %v977_v50  ;;  %v1392_v63 = vunpack.i.h.bf16 %v1388_v62  ;;  %v1389_v1 = vunpack.i.l.bf16 %v1388_v62 }
 0x363   :  { %1000 = vmatpush1.bf16.msra.mxu1 %v976_v61 }
 0x365   :  { %v1393_v2 = vpop.trf.xlu0 }
 0x366   :  { %v1397_v51 = vunpack.i.h.bf16 %v1393_v2  ;;  %v1394_v3 = vunpack.i.l.bf16 %v1393_v2 }
 0x368   :  { %v979_v4 = vpack.c.bf16 %v1394_v3, %v1389_v1  ;;  %v978_v5 = vpack.c.bf16 %v1397_v51, %v1392_v63 }
 0x369   :  { %v1398_v6 = vpop.trf.xlu0 }
 0x36a   :  { %1001 = vmatprep.subr.bf16.mxu1 %v979_v4  ;;  %v1402_v7 = vunpack.i.h.bf16 %v1398_v6  ;;  %v1399_v8 = vunpack.i.l.bf16 %v1398_v6 }
 0x36b   :  { %1002 = vmatpush1.bf16.msra.mxu1 %v978_v5 }
 0x36d   :  { %v1403_v9 = vpop.trf.xlu0 }
 0x36e   :  { %v1407_v10 = vunpack.i.h.bf16 %v1403_v9  ;;  %v1404_v11 = vunpack.i.l.bf16 %v1403_v9 }
 0x370   :  { %v981_v12 = vpack.c.bf16 %v1404_v11, %v1399_v8  ;;  %v980_v28 = vpack.c.bf16 %v1407_v10, %v1402_v7 }
 0x371   :  { %v1408_v13 = vpop.trf.xlu0 }
 0x372   :  { %1003 = vmatprep.subr.bf16.mxu1 %v981_v12  ;;  %v1412_v14 = vunpack.i.h.bf16 %v1408_v13  ;;  %v1409_v0 = vunpack.i.l.bf16 %v1408_v13 }
 0x373   :  { %1004 = vmatpush1.bf16.msra.mxu1 %v980_v28 }
 0x375   :  { %v1413_v15 = vpop.trf.xlu0 }
 0x376   :  { %v1417_v16 = vunpack.i.h.bf16 %v1413_v15  ;;  %v1414_v17 = vunpack.i.l.bf16 %v1413_v15 }
 0x378   :  { %v983_v52 = vpack.c.bf16 %v1414_v17, %v1409_v0  ;;  %v982_v18 = vpack.c.bf16 %v1417_v16, %v1412_v14 }
 0x379   :  { %v1418_v19 = vpop.trf.xlu0 }
 0x37a   :  { %1005 = vmatprep.subr.bf16.mxu1 %v983_v52  ;;  %v1422_v20 = vunpack.i.h.bf16 %v1418_v19  ;;  %v1419_v21 = vunpack.i.l.bf16 %v1418_v19 }
 0x37b   :  { %1006 = vmatpush1.bf16.msra.mxu1 %v982_v18 }
 0x37d   :  { %v1423_v22 = vpop.trf.xlu0 }
 0x37e   :  { %v1427_v31 = vunpack.i.h.bf16 %v1423_v22  ;;  %v1424_v23 = vunpack.i.l.bf16 %v1423_v22 }
 0x380   :  { %v984_v53 = vpack.c.bf16 %v1427_v31, %v1422_v20  ;;  %v985_v24 = vpack.c.bf16 %v1424_v23, %v1419_v21 }
 0x382   :  { %1007 = vmatprep.subr.bf16.mxu1 %v985_v24 }
 0x383   :  { %1008 = vmatpush1.bf16.msra.mxu1 %v984_v53 }
 0x386   :  { %1026 = vmatmul.mubr.bf16.vlgmr.msra.gmra.mrb[48].mxu1 %v986_v25 }
 0x459   :  { %v1027_v27 = vpop.f32.mrb[48].mxu1 }
 0x45a   :  { %v1028_v29 = vadd.f32 %v1027_v27, %v991_v26  ;;  %v1029_v30 = vpop.f32.mrb[49].mxu1 }
 0x45b   :  { %v1030_v32 = vadd.f32 %v1029_v30, %v991_v26  ;;  %v1031_v33 = vpop.f32.mrb[50].mxu1 }
 0x45c   :  { %v1034_v34 = vrot.slane %v1028_v29, 4  ;;  %1068 = vst [vmem:[%s1835_s9] sm:$0xff] %v1028_v29  ;;  %v1032_v35 = vpop.f32.mrb[51].mxu1 }
 0x45d   :  { %v1040_v36 = vrot.slane %v1030_v32, 4  ;;  %1069 = vst [vmem:[%s1835_s9 + $0x8] sm:$0xff] %v1030_v32 }
 0x45e   :  { %v1035_v37 = vmax.f32 %v1028_v29, %v1034_v34 }
 0x45f   :  { %v1041_v38 = vmax.f32 %v1030_v32, %v1040_v36 }
 0x460   :  { %v1036_v39 = vrot.slane %v1035_v37, 2 }
 0x461   :  { %v1042_v40 = vrot.slane %v1041_v38, 2 }
 0x462   :  { %v1037_v41 = vmax.f32 %v1035_v37, %v1036_v39 }
 0x463   :  { %v1043_v42 = vmax.f32 %v1041_v38, %v1042_v40 }
 0x464   :  { %v1038_v43 = vrot.slane %v1037_v41, 1 }
 0x465   :  { %v1044_v44 = vrot.slane %v1043_v42, 1 }
 0x466   :  { %v1039_v45 = vmax.f32 %v1037_v41, %v1038_v43 }
 0x467   :  { %v1045_v46 = vmax.f32 %v1043_v42, %v1044_v44 }
 0x468   :  { %v1046_v47 = vsub.f32 %v1028_v29, %v1039_v45 }
 0x469   :  { %v1047_v54 = vsub.f32 %v1030_v32, %v1045_v46 }
 0x46a   :  { %v1048_v55 = vmul.f32 1.442695, %v1046_v47 }
 0x46b   :  { %v1050_v56 = vmul.f32 1.442695, %v1047_v54 }
 0x46c   :  { %1448 = vpow2.f32 %v1048_v55 }
 0x46d   :  { %1450 = vpow2.f32 %v1050_v56 }
 0x476   :  { %v1449_v57 = vpop.eup %1448 }
 0x477   :  { %v1451_v48 = vpop.eup %1450  ;;  %v1052_v58 = vrot.slane %v1449_v57, 4 }
 0x478   :  { %v1058_v49 = vrot.slane %v1451_v48, 4 }
 0x479   :  { %v1053_v59 = vadd.f32 %v1449_v57, %v1052_v58 }
 0x47a   :  { %v1059_v60 = vadd.f32 %v1451_v48, %v1058_v49 }
 0x47b   :  { %v1054_v50 = vrot.slane %v1053_v59, 2 }
 0x47c   :  { %v1060_v61 = vrot.slane %v1059_v60, 2 }
 0x47d   :  { %v1055_v62 = vadd.f32 %v1054_v50, %v1053_v59 }
 0x47e   :  { %v1061_v63 = vadd.f32 %v1060_v61, %v1059_v60 }
 0x47f   :  { %v1056_v1 = vrot.slane %v1055_v62, 1 }
 0x480   :  { %v1062_v2 = vrot.slane %v1061_v63, 1 }
 0x481   :  { %v1057_v51 = vadd.f32 %v1056_v1, %v1055_v62 }
 0x482   :  { %v1063_v3 = vadd.f32 %v1062_v2, %v1061_v63 }
 0x483   :  { %1452 = vrcp.f32 %v1057_v51 }
 0x484   :  { %1454 = vrcp.f32 %v1063_v3 }
 0x48d   :  { %v1453_v4 = vpop.eup %1452 }
 0x48e   :  { %v1455_v5 = vpop.eup %1454  ;;  %v1065_v6 = vmul.f32 %v1453_v4, %v1449_v57 }
 0x48f   :  { %v1067_v7 = vmul.f32 %v1455_v5, %v1451_v48 }
 0x490   :  { %1070 = vst [vmem:[%s1835_s9 + $0x10] sm:$0xff] %v1065_v6 }
 0x491   :  { %1071 = vst [vmem:[%s1835_s9 + $0x18] sm:$0xff] %v1067_v7 }

</bundles_post_ra>
